<compile_context>
chip_gen: v7x
topology: tpu7x:2x2x1
jax: 0.10.0
libtpu: 0.0.40
codegen_flags: <defaults>
</compile_context>

<pallas_src>
import functools
from typing import List, Optional

import jax
import jax.numpy as jnp
from jax.experimental import pallas as pl
from jax.experimental.pallas import tpu as pltpu

_SUBLANE = 8          # batch tiles are multiples of 8 sublanes (or == B)
_MAX_TILE_B = 1024    # upper bound on the batch tile (review: 512-2048)


def _round_up(n: int, m: int) -> int:
    return ((n + m - 1) // m) * m


def _device_kind() -> str:
    try:
        return jax.devices()[0].device_kind.lower()
    except Exception:
        return ""


def _vmem_capacity_bytes() -> int:
    try:
        return int(pltpu.get_tpu_info().vmem_capacity_bytes)
    except Exception:
        # Fallback heuristic: v7x has 64 MiB per TensorCore, older gens 128 MiB.
        return 64 * 2**20 if "v7" in _device_kind() else 128 * 2**20


def _default_compute_dtype():
    kind = _device_kind()
    if "v6" in kind or "v7" in kind:
        return jnp.bfloat16      # bf16 MXU fast path (f32 accumulation)
    return jnp.float32           # v5e / unknown: keep f32


def _mlp_kernel(x_ref, *refs, n_layers: int):
    """Fused MLP forward on one batch tile.

    refs = (w0, b0, w1, b1, ..., w_{L-1}, b_{L-1}, out_ref).
    Weights may be f32 or bf16; activations are cast to the weight dtype at
    the MXU input, accumulation is f32, bias/ReLU/output stay f32.
    """
    out_ref = refs[-1]
    params = refs[:-1]
    h = x_ref[...]                                     # (tile_b, in_dim)
    for i in range(n_layers):
        w = params[2 * i][...]                         # (pd_i, pd_{i+1})
        b = params[2 * i + 1][...]                     # (1, pd_{i+1}) f32
        h = jnp.dot(h.astype(w.dtype), w,
                    preferred_element_type=jnp.float32) + b
        if i < n_layers - 1:
            h = jnp.maximum(h, 0.0)                    # ReLU (VPU, f32)
    out_ref[...] = h.astype(out_ref.dtype)


def autoencoder_forward(x, weights, biases, *,
                        compute_dtype=None,
                        tile_b: Optional[int] = None):
    """Fused autoencoder MLP forward.

    Args:
      x:       (B, input_dim) array.
      weights: list of (in_dim, out_dim) float32 arrays (transposed vs PyTorch).
      biases:  list of (out_dim,) float32 arrays.
      compute_dtype: MXU input dtype; None -> bf16 on v6e/v7x, f32 otherwise.
      tile_b:  batch tile size; None -> auto (large, >=2 grid steps when B big).
    Returns:
      (B, out_dim) float32.
    """
    B, in_dim = x.shape
    n_layers = len(weights)
    dims = [weights[0].shape[0]] + [w.shape[1] for w in weights]
    assert dims[0] == in_dim
    out_dim = dims[-1]

    if compute_dtype is None:
        compute_dtype = _default_compute_dtype()

    kind = _device_kind()
    big_mxu = ("v6" in kind) or ("v7" in kind)   # 2x256x256 MXU generations

    def _pad_hidden(d: int) -> int:
        mult = 256 if (big_mxu and d >= 256) else 128
        return _round_up(d, mult)

    # Only hidden dims are padded (exact zero padding). Input/output feature
    # dims stay at their true size: no host pad/slice passes, no HBM inflation.
    pdims = [in_dim] + [_pad_hidden(d) for d in dims[1:-1]] + [out_dim]

    w_pad, b_pad = [], []
    for i, (w, b) in enumerate(zip(weights, biases)):
        ip, op = pdims[i], pdims[i + 1]
        wp = jnp.zeros((ip, op), dtype=compute_dtype)
        wp = wp.at[: w.shape[0], : w.shape[1]].set(w.astype(compute_dtype))
        bp = jnp.zeros((1, op), dtype=jnp.float32)
        bp = bp.at[0, : b.shape[0]].set(b.astype(jnp.float32))
        w_pad.append(wp)
        b_pad.append(bp)
    flat_params = []
    for wp, bp in zip(w_pad, b_pad):
        flat_params += [wp, bp]

    # ---- Batch tiling: no batch padding, partial last tile is fine. ----
    # tile_b must be a multiple of 8 sublanes OR equal to B (full-dim block).
    if tile_b is None:
        if B < 2 * _SUBLANE:
            tile_b = B
        else:
            # Large tile but at least 2 grid steps (megacore sharding on v7x).
            tile_b = min(_MAX_TILE_B, _round_up(pl.cdiv(B, 2), _SUBLANE))
    tile_b = int(tile_b)
    if tile_b >= B:
        tile_b = B
    elif tile_b % _SUBLANE != 0:
        tile_b = max(_SUBLANE, (tile_b // _SUBLANE) * _SUBLANE)
        tile_b = min(tile_b, B)

    # ---- VMEM budget (generation-aware, with headroom). ----
    cap = int(0.82 * _vmem_capacity_bytes())      # ~52 MiB v7x, ~105 MiB v5e/v6e
    x_item = jnp.dtype(x.dtype).itemsize
    param_bytes = sum(int(p.size) * jnp.dtype(p.dtype).itemsize
                      for p in flat_params)
    max_h = max(pdims)

    def _need(tb: int, param_buf: int) -> int:
        io = 2 * tb * (in_dim * x_item + out_dim * 4)   # double-buffered x/out
        act = 2 * tb * max_h * 4                        # live f32 intermediates
        return param_buf * param_bytes + io + act

    # Shrink the tile if even a conservative (double-buffered-params) estimate
    # would not fit under the per-generation cap.
    while tile_b > _SUBLANE and tile_b % _SUBLANE == 0 and _need(tile_b, 2) > cap:
        tile_b = max(_SUBLANE, _round_up(tile_b // 2, _SUBLANE))

    grid = (pl.cdiv(B, tile_b),)

    # ---- Advisory cost estimate (true, un-inflated byte counts). ----
    flops = int(2 * B * sum(pdims[i] * pdims[i + 1] for i in range(n_layers)))
    bytes_accessed = int(B * in_dim * x_item + param_bytes + B * out_dim * 4)
    cost = pl.CostEstimate(flops=flops, transcendentals=0,
                           bytes_accessed=bytes_accessed)

    kernel = functools.partial(_mlp_kernel, n_layers=n_layers)
    x_spec = pl.BlockSpec((tile_b, in_dim), lambda i: (i, 0))
    out_spec = pl.BlockSpec((tile_b, out_dim), lambda i: (i, 0))

    def _run(single_buffer_params: bool):
        if single_buffer_params:
            # Constant block index across the grid -> single buffer suffices.
            p_specs = [pl.BlockSpec(p.shape, lambda i: (0, 0),
                                    pipeline_mode=pl.Buffered(1))
                       for p in flat_params]
            pbuf = 1
        else:
            p_specs = [pl.BlockSpec(p.shape, lambda i: (0, 0))
                       for p in flat_params]
            pbuf = 2
        vmem_limit = int(min(cap, max(1.3 * _need(tile_b, pbuf), 8 * 2**20)))
        return pl.pallas_call(
            kernel,
            out_shape=jax.ShapeDtypeStruct((B, out_dim), jnp.float32),
            grid=grid,
            in_specs=[x_spec] + p_specs,
            out_specs=out_spec,
            compiler_params=pltpu.CompilerParams(
                dimension_semantics=("parallel",),   # batch axis (megacore v7x)
                vmem_limit_bytes=vmem_limit,
            ),
            cost_estimate=cost,
        )(x, *flat_params)

    try:
        return _run(True)
    except Exception:
        # pipeline_mode=pl.Buffered(1) unsupported on this jax build: fall back
        # to default (double-buffered, still VMEM-resident) param specs.
        return _run(False)


def init_autoencoder_params(key, input_dim: int,
                            encoder_hidden_dims: List[int],
                            decoder_hidden_dims: List[int]):
    """Mirror nn.Linear's U(-1/sqrt(in), 1/sqrt(in)) init; store W as (in, out)."""
    dims = ([input_dim] + list(encoder_hidden_dims)
            + list(decoder_hidden_dims) + [input_dim])
    weights, biases = [], []
    for in_d, out_d in zip(dims[:-1], dims[1:]):
        key, kw, kb = jax.random.split(key, 3)
        bound = 1.0 / jnp.sqrt(jnp.float32(in_d))
        w = jax.random.uniform(kw, (in_d, out_d), jnp.float32, -bound, bound)
        b = jax.random.uniform(kb, (out_d,), jnp.float32, -bound, bound)
        weights.append(w)
        biases.append(b)
    return weights, biases


def _reference_forward(x, weights, biases, compute_dtype=jnp.float32):
    """Plain-JAX reference matching the kernel's compute dtype."""
    h = x.astype(jnp.float32)
    n = len(weights)
    for i, (w, b) in enumerate(zip(weights, biases)):
        h = jnp.dot(h.astype(compute_dtype), w.astype(compute_dtype),
                    preferred_element_type=jnp.float32) + b.astype(jnp.float32)
        if i < n - 1:
            h = jnp.maximum(h, 0.0)
    return h


# TODO(synk): training loop / Adam optimizer / reconstruction_loss are host-side
# utilities outside forward() and are intentionally not implemented as kernels.

if __name__ == "__main__":
    # AutoEncoder(input_dim=16, encoder_hidden_dims=[32, 8],
    #             decoder_hidden_dims=[32]) -> dims 16->32->8->32->16.
    input_dim = 16
    encoder_hidden_dims = [32, 8]
    decoder_hidden_dims = [32]

    key = jax.random.PRNGKey(0)
    key, kx1, kx2, kx3 = jax.random.split(key, 4)
    weights, biases = init_autoencoder_params(
        key, input_dim, encoder_hidden_dims, decoder_hidden_dims)

    # --- Test 1: toy batch (B=2), f32 MXU path, single grid step. ---
    x_small = jax.random.normal(kx1, (2, input_dim), dtype=jnp.float32)
    out_f32 = jax.block_until_ready(
        autoencoder_forward(x_small, weights, biases,
                            compute_dtype=jnp.float32))
    ref_small = _reference_forward(x_small, weights, biases)
    assert out_f32.shape == (2, input_dim)
    assert jnp.allclose(out_f32, ref_small, atol=2e-5, rtol=2e-5), \
        "f32 mismatch vs reference"

    # --- Test 2: larger batch, auto tile -> multiple grid steps. ---
    x_big = jax.random.normal(kx2, (64, input_dim), dtype=jnp.float32)
    out_big = jax.block_until_ready(
        autoencoder_forward(x_big, weights, biases,
                            compute_dtype=jnp.float32))
    ref_big = _reference_forward(x_big, weights, biases)
    assert out_big.shape == (64, input_dim)
    assert jnp.allclose(out_big, ref_big, atol=2e-5, rtol=2e-5), \
        "f32 (tiled) mismatch vs reference"

    # --- Test 3: ragged batch (partial last tile, no host padding). ---
    x_rag = jax.random.normal(kx3, (50, input_dim), dtype=jnp.float32)
    out_rag = jax.block_until_ready(
        autoencoder_forward(x_rag, weights, biases,
                            compute_dtype=jnp.float32, tile_b=16))
    ref_rag = _reference_forward(x_rag, weights, biases)
    assert out_rag.shape == (50, input_dim)
    assert jnp.allclose(out_rag, ref_rag, atol=2e-5, rtol=2e-5), \
        "f32 (ragged) mismatch vs reference"

    # --- Test 4: bf16 MXU inputs vs bf16-cast reference (f32 accumulation). ---
    out_bf16 = jax.block_until_ready(
        autoencoder_forward(x_big, weights, biases,
                            compute_dtype=jnp.bfloat16))
    ref_bf16 = _reference_forward(x_big, weights, biases,
                                  compute_dtype=jnp.bfloat16)
    assert jnp.allclose(out_bf16, ref_bf16, atol=2e-2, rtol=2e-2), \
        "bf16 mismatch vs bf16 reference"

    # --- Test 5: generation-default compute dtype. ---
    auto_dtype = _default_compute_dtype()
    out_auto = jax.block_until_ready(
        autoencoder_forward(x_big, weights, biases))
    ref_auto = _reference_forward(x_big, weights, biases,
                                  compute_dtype=auto_dtype)
    tol = 2e-5 if auto_dtype == jnp.float32 else 2e-2
    assert jnp.allclose(out_auto, ref_auto, atol=tol, rtol=tol), \
        "auto-dtype mismatch vs matched reference"

    print("KERNEL_OK")
</pallas_src>

<mosaic_0001>
module attributes {stable_mosaic.version = 11 : i64} {
  func.func @_mlp_kernel(%arg0: i32, %arg1: memref<2x16xf32, #tpu.memory_space<vmem>>, %arg2: memref<16x128xf32, #tpu.memory_space<vmem>>, %arg3: memref<1x128xf32, #tpu.memory_space<vmem>>, %arg4: memref<128x128xf32, #tpu.memory_space<vmem>>, %arg5: memref<1x128xf32, #tpu.memory_space<vmem>>, %arg6: memref<128x128xf32, #tpu.memory_space<vmem>>, %arg7: memref<1x128xf32, #tpu.memory_space<vmem>>, %arg8: memref<128x16xf32, #tpu.memory_space<vmem>>, %arg9: memref<1x16xf32, #tpu.memory_space<vmem>>, %arg10: memref<2x16xf32, #tpu.memory_space<vmem>>) attributes {dimension_semantics = [#tpu.dimension_semantics<parallel>], iteration_bounds = array<i64: 1>, scalar_prefetch = 0 : i64, scratch_operands = 0 : i64, tpu.core_type = #tpu.core_type<tc>, window_params = [{transform_indices = @transform_0, window_bounds = array<i64: 2, 16>}, {pipeline_mode = #tpu.pipeline_mode<synchronous>, transform_indices = @transform_1, window_bounds = array<i64: 16, 128>}, {pipeline_mode = #tpu.pipeline_mode<synchronous>, transform_indices = @transform_2, window_bounds = array<i64: 1, 128>}, {pipeline_mode = #tpu.pipeline_mode<synchronous>, transform_indices = @transform_3, window_bounds = array<i64: 128, 128>}, {pipeline_mode = #tpu.pipeline_mode<synchronous>, transform_indices = @transform_4, window_bounds = array<i64: 1, 128>}, {pipeline_mode = #tpu.pipeline_mode<synchronous>, transform_indices = @transform_5, window_bounds = array<i64: 128, 128>}, {pipeline_mode = #tpu.pipeline_mode<synchronous>, transform_indices = @transform_6, window_bounds = array<i64: 1, 128>}, {pipeline_mode = #tpu.pipeline_mode<synchronous>, transform_indices = @transform_7, window_bounds = array<i64: 128, 16>}, {pipeline_mode = #tpu.pipeline_mode<synchronous>, transform_indices = @transform_8, window_bounds = array<i64: 1, 16>}, {transform_indices = @transform_9, window_bounds = array<i64: 2, 16>}]} {
    %c0 = arith.constant 0 : index
    %c0_0 = arith.constant 0 : index
    %0 = vector.load %arg1[%c0, %c0_0] : memref<2x16xf32, #tpu.memory_space<vmem>>, vector<2x16xf32>
    %c0_1 = arith.constant 0 : index
    %c0_2 = arith.constant 0 : index
    %1 = vector.load %arg2[%c0_1, %c0_2] : memref<16x128xf32, #tpu.memory_space<vmem>>, vector<16x128xf32>
    %c0_3 = arith.constant 0 : index
    %c0_4 = arith.constant 0 : index
    %2 = vector.load %arg3[%c0_3, %c0_4] : memref<1x128xf32, #tpu.memory_space<vmem>>, vector<1x128xf32>
    %cst = arith.constant dense<0.000000e+00> : vector<2x128xf32>
    %3 = tpu.matmul %0, %1, %cst {dimension_numbers = #tpu.dot_dimension_numbers<[1], [0], [0], [1], [0, 0, 1, 1], [], []>} : vector<2x16xf32>, vector<16x128xf32>, vector<2x128xf32> -> vector<2x128xf32>
    %4 = vector.broadcast %2 : vector<1x128xf32> to vector<2x128xf32>
    %5 = arith.addf %3, %4 : vector<2x128xf32>
    %cst_5 = arith.constant 0.000000e+00 : f32
    %6 = vector.broadcast %cst_5 : f32 to vector<2x128xf32>
    %7 = arith.maximumf %5, %6 : vector<2x128xf32>
    %c0_6 = arith.constant 0 : index
    %c0_7 = arith.constant 0 : index
    %8 = vector.load %arg4[%c0_6, %c0_7] : memref<128x128xf32, #tpu.memory_space<vmem>>, vector<128x128xf32>
    %c0_8 = arith.constant 0 : index
    %c0_9 = arith.constant 0 : index
    %9 = vector.load %arg5[%c0_8, %c0_9] : memref<1x128xf32, #tpu.memory_space<vmem>>, vector<1x128xf32>
    %cst_10 = arith.constant dense<0.000000e+00> : vector<2x128xf32>
    %10 = tpu.matmul %7, %8, %cst_10 {dimension_numbers = #tpu.dot_dimension_numbers<[1], [0], [0], [1], [0, 0, 1, 1], [], []>} : vector<2x128xf32>, vector<128x128xf32>, vector<2x128xf32> -> vector<2x128xf32>
    %11 = vector.broadcast %9 : vector<1x128xf32> to vector<2x128xf32>
    %12 = arith.addf %10, %11 : vector<2x128xf32>
    %cst_11 = arith.constant 0.000000e+00 : f32
    %13 = vector.broadcast %cst_11 : f32 to vector<2x128xf32>
    %14 = arith.maximumf %12, %13 : vector<2x128xf32>
    %c0_12 = arith.constant 0 : index
    %c0_13 = arith.constant 0 : index
    %15 = vector.load %arg6[%c0_12, %c0_13] : memref<128x128xf32, #tpu.memory_space<vmem>>, vector<128x128xf32>
    %c0_14 = arith.constant 0 : index
    %c0_15 = arith.constant 0 : index
    %16 = vector.load %arg7[%c0_14, %c0_15] : memref<1x128xf32, #tpu.memory_space<vmem>>, vector<1x128xf32>
    %cst_16 = arith.constant dense<0.000000e+00> : vector<2x128xf32>
    %17 = tpu.matmul %14, %15, %cst_16 {dimension_numbers = #tpu.dot_dimension_numbers<[1], [0], [0], [1], [0, 0, 1, 1], [], []>} : vector<2x128xf32>, vector<128x128xf32>, vector<2x128xf32> -> vector<2x128xf32>
    %18 = vector.broadcast %16 : vector<1x128xf32> to vector<2x128xf32>
    %19 = arith.addf %17, %18 : vector<2x128xf32>
    %cst_17 = arith.constant 0.000000e+00 : f32
    %20 = vector.broadcast %cst_17 : f32 to vector<2x128xf32>
    %21 = arith.maximumf %19, %20 : vector<2x128xf32>
    %c0_18 = arith.constant 0 : index
    %c0_19 = arith.constant 0 : index
    %22 = vector.load %arg8[%c0_18, %c0_19] : memref<128x16xf32, #tpu.memory_space<vmem>>, vector<128x16xf32>
    %c0_20 = arith.constant 0 : index
    %c0_21 = arith.constant 0 : index
    %23 = vector.load %arg9[%c0_20, %c0_21] : memref<1x16xf32, #tpu.memory_space<vmem>>, vector<1x16xf32>
    %cst_22 = arith.constant dense<0.000000e+00> : vector<2x16xf32>
    %24 = tpu.matmul %21, %22, %cst_22 {dimension_numbers = #tpu.dot_dimension_numbers<[1], [0], [0], [1], [0, 0, 1, 1], [], []>} : vector<2x128xf32>, vector<128x16xf32>, vector<2x16xf32> -> vector<2x16xf32>
    %25 = vector.broadcast %23 : vector<1x16xf32> to vector<2x16xf32>
    %26 = arith.addf %24, %25 : vector<2x16xf32>
    %c0_23 = arith.constant 0 : index
    %c0_24 = arith.constant 0 : index
    %27 = vector.load %arg10[%c0_23, %c0_24] : memref<2x16xf32, #tpu.memory_space<vmem>>, vector<2x16xf32>
    tpu.vector_store %arg10[%c0_23, %c0_24], %26 {strides = array<i32>} : memref<2x16xf32, #tpu.memory_space<vmem>>, vector<2x16xf32>,
    return
  }
  func.func @transform_0(%arg0: i32) -> (i32, i32) {
    %c0_i32 = arith.constant 0 : i32
    %c0_i32_0 = arith.constant 0 : i32
    return %arg0, %c0_i32 : i32, i32
  }
  func.func @transform_1(%arg0: i32) -> (i32, i32) {
    %c0_i32 = arith.constant 0 : i32
    %c0_i32_0 = arith.constant 0 : i32
    %c0_i32_1 = arith.constant 0 : i32
    return %c0_i32, %c0_i32_0 : i32, i32
  }
  func.func @transform_2(%arg0: i32) -> (i32, i32) {
    %c0_i32 = arith.constant 0 : i32
    %c0_i32_0 = arith.constant 0 : i32
    %c0_i32_1 = arith.constant 0 : i32
    return %c0_i32, %c0_i32_0 : i32, i32
  }
  func.func @transform_3(%arg0: i32) -> (i32, i32) {
    %c0_i32 = arith.constant 0 : i32
    %c0_i32_0 = arith.constant 0 : i32
    %c0_i32_1 = arith.constant 0 : i32
    return %c0_i32, %c0_i32_0 : i32, i32
  }
  func.func @transform_4(%arg0: i32) -> (i32, i32) {
    %c0_i32 = arith.constant 0 : i32
    %c0_i32_0 = arith.constant 0 : i32
    %c0_i32_1 = arith.constant 0 : i32
    return %c0_i32, %c0_i32_0 : i32, i32
  }
  func.func @transform_5(%arg0: i32) -> (i32, i32) {
    %c0_i32 = arith.constant 0 : i32
    %c0_i32_0 = arith.constant 0 : i32
    %c0_i32_1 = arith.constant 0 : i32
    return %c0_i32, %c0_i32_0 : i32, i32
  }
  func.func @transform_6(%arg0: i32) -> (i32, i32) {
    %c0_i32 = arith.constant 0 : i32
    %c0_i32_0 = arith.constant 0 : i32
    %c0_i32_1 = arith.constant 0 : i32
    return %c0_i32, %c0_i32_0 : i32, i32
  }
  func.func @transform_7(%arg0: i32) -> (i32, i32) {
    %c0_i32 = arith.constant 0 : i32
    %c0_i32_0 = arith.constant 0 : i32
    %c0_i32_1 = arith.constant 0 : i32
    return %c0_i32, %c0_i32_0 : i32, i32
  }
  func.func @transform_8(%arg0: i32) -> (i32, i32) {
    %c0_i32 = arith.constant 0 : i32
    %c0_i32_0 = arith.constant 0 : i32
    %c0_i32_1 = arith.constant 0 : i32
    return %c0_i32, %c0_i32_0 : i32, i32
  }
  func.func @transform_9(%arg0: i32) -> (i32, i32) {
    %c0_i32 = arith.constant 0 : i32
    %c0_i32_0 = arith.constant 0 : i32
    return %arg0, %c0_i32 : i32, i32
  }
}

module attributes {stable_mosaic.version = 11 : i64} {
  func.func @_mlp_kernel(%arg0: i32, %arg1: memref<2x16xf32, #tpu.memory_space<vmem>>, %arg2: memref<16x128xf32, #tpu.memory_space<vmem>>, %arg3: memref<1x128xf32, #tpu.memory_space<vmem>>, %arg4: memref<128x128xf32, #tpu.memory_space<vmem>>, %arg5: memref<1x128xf32, #tpu.memory_space<vmem>>, %arg6: memref<128x128xf32, #tpu.memory_space<vmem>>, %arg7: memref<1x128xf32, #tpu.memory_space<vmem>>, %arg8: memref<128x16xf32, #tpu.memory_space<vmem>>, %arg9: memref<1x16xf32, #tpu.memory_space<vmem>>, %arg10: memref<2x16xf32, #tpu.memory_space<vmem>>) attributes {dimension_semantics = [#tpu.dimension_semantics<parallel>], iteration_bounds = array<i64: 1>, scalar_prefetch = 0 : i64, scratch_operands = 0 : i64, tpu.core_type = #tpu.core_type<tc>, window_params = [{transform_indices = @transform_0, window_bounds = array<i64: 2, 16>}, {pipeline_mode = #tpu.pipeline_mode<synchronous>, transform_indices = @transform_1, window_bounds = array<i64: 16, 128>}, {pipeline_mode = #tpu.pipeline_mode<synchronous>, transform_indices = @transform_2, window_bounds = array<i64: 1, 128>}, {pipeline_mode = #tpu.pipeline_mode<synchronous>, transform_indices = @transform_3, window_bounds = array<i64: 128, 128>}, {pipeline_mode = #tpu.pipeline_mode<synchronous>, transform_indices = @transform_4, window_bounds = array<i64: 1, 128>}, {pipeline_mode = #tpu.pipeline_mode<synchronous>, transform_indices = @transform_5, window_bounds = array<i64: 128, 128>}, {pipeline_mode = #tpu.pipeline_mode<synchronous>, transform_indices = @transform_6, window_bounds = array<i64: 1, 128>}, {pipeline_mode = #tpu.pipeline_mode<synchronous>, transform_indices = @transform_7, window_bounds = array<i64: 128, 16>}, {pipeline_mode = #tpu.pipeline_mode<synchronous>, transform_indices = @transform_8, window_bounds = array<i64: 1, 16>}, {transform_indices = @transform_9, window_bounds = array<i64: 2, 16>}]} {
    %c0 = arith.constant 0 : index
    %c0_0 = arith.constant 0 : index
    %0 = vector.load %arg1[%c0, %c0_0] : memref<2x16xf32, #tpu.memory_space<vmem>>, vector<2x16xf32>
    %c0_1 = arith.constant 0 : index
    %c0_2 = arith.constant 0 : index
    %1 = vector.load %arg2[%c0_1, %c0_2] : memref<16x128xf32, #tpu.memory_space<vmem>>, vector<16x128xf32>
    %c0_3 = arith.constant 0 : index
    %c0_4 = arith.constant 0 : index
    %2 = vector.load %arg3[%c0_3, %c0_4] : memref<1x128xf32, #tpu.memory_space<vmem>>, vector<1x128xf32>
    %cst = arith.constant dense<0.000000e+00> : vector<2x128xf32>
    %3 = tpu.matmul %0, %1, %cst {dimension_numbers = #tpu.dot_dimension_numbers<[1], [0], [0], [1], [0, 0, 1, 1], [], []>} : vector<2x16xf32>, vector<16x128xf32>, vector<2x128xf32> -> vector<2x128xf32>
    %4 = vector.broadcast %2 : vector<1x128xf32> to vector<2x128xf32>
    %5 = arith.addf %3, %4 : vector<2x128xf32>
    %cst_5 = arith.constant 0.000000e+00 : f32
    %6 = vector.broadcast %cst_5 : f32 to vector<2x128xf32>
    %7 = arith.maximumf %5, %6 : vector<2x128xf32>
    %c0_6 = arith.constant 0 : index
    %c0_7 = arith.constant 0 : index
    %8 = vector.load %arg4[%c0_6, %c0_7] : memref<128x128xf32, #tpu.memory_space<vmem>>, vector<128x128xf32>
    %c0_8 = arith.constant 0 : index
    %c0_9 = arith.constant 0 : index
    %9 = vector.load %arg5[%c0_8, %c0_9] : memref<1x128xf32, #tpu.memory_space<vmem>>, vector<1x128xf32>
    %cst_10 = arith.constant dense<0.000000e+00> : vector<2x128xf32>
    %10 = tpu.matmul %7, %8, %cst_10 {dimension_numbers = #tpu.dot_dimension_numbers<[1], [0], [0], [1], [0, 0, 1, 1], [], []>} : vector<2x128xf32>, vector<128x128xf32>, vector<2x128xf32> -> vector<2x128xf32>
    %11 = vector.broadcast %9 : vector<1x128xf32> to vector<2x128xf32>
    %12 = arith.addf %10, %11 : vector<2x128xf32>
    %cst_11 = arith.constant 0.000000e+00 : f32
    %13 = vector.broadcast %cst_11 : f32 to vector<2x128xf32>
    %14 = arith.maximumf %12, %13 : vector<2x128xf32>
    %c0_12 = arith.constant 0 : index
    %c0_13 = arith.constant 0 : index
    %15 = vector.load %arg6[%c0_12, %c0_13] : memref<128x128xf32, #tpu.memory_space<vmem>>, vector<128x128xf32>
    %c0_14 = arith.constant 0 : index
    %c0_15 = arith.constant 0 : index
    %16 = vector.load %arg7[%c0_14, %c0_15] : memref<1x128xf32, #tpu.memory_space<vmem>>, vector<1x128xf32>
    %cst_16 = arith.constant dense<0.000000e+00> : vector<2x128xf32>
    %17 = tpu.matmul %14, %15, %cst_16 {dimension_numbers = #tpu.dot_dimension_numbers<[1], [0], [0], [1], [0, 0, 1, 1], [], []>} : vector<2x128xf32>, vector<128x128xf32>, vector<2x128xf32> -> vector<2x128xf32>
    %18 = vector.broadcast %16 : vector<1x128xf32> to vector<2x128xf32>
    %19 = arith.addf %17, %18 : vector<2x128xf32>
    %cst_17 = arith.constant 0.000000e+00 : f32
    %20 = vector.broadcast %cst_17 : f32 to vector<2x128xf32>
    %21 = arith.maximumf %19, %20 : vector<2x128xf32>
    %c0_18 = arith.constant 0 : index
    %c0_19 = arith.constant 0 : index
    %22 = vector.load %arg8[%c0_18, %c0_19] : memref<128x16xf32, #tpu.memory_space<vmem>>, vector<128x16xf32>
    %c0_20 = arith.constant 0 : index
    %c0_21 = arith.constant 0 : index
    %23 = vector.load %arg9[%c0_20, %c0_21] : memref<1x16xf32, #tpu.memory_space<vmem>>, vector<1x16xf32>
    %cst_22 = arith.constant dense<0.000000e+00> : vector<2x16xf32>
    %24 = tpu.matmul %21, %22, %cst_22 {dimension_numbers = #tpu.dot_dimension_numbers<[1], [0], [0], [1], [0, 0, 1, 1], [], []>} : vector<2x128xf32>, vector<128x16xf32>, vector<2x16xf32> -> vector<2x16xf32>
    %25 = vector.broadcast %23 : vector<1x16xf32> to vector<2x16xf32>
    %26 = arith.addf %24, %25 : vector<2x16xf32>
    %c0_23 = arith.constant 0 : index
    %c0_24 = arith.constant 0 : index
    %27 = vector.load %arg10[%c0_23, %c0_24] : memref<2x16xf32, #tpu.memory_space<vmem>>, vector<2x16xf32>
    tpu.vector_store %arg10[%c0_23, %c0_24], %26 {strides = array<i32>} : memref<2x16xf32, #tpu.memory_space<vmem>>, vector<2x16xf32>,
    return
  }
  func.func @transform_0(%arg0: i32) -> (i32, i32) {
    %c0_i32 = arith.constant 0 : i32
    %c0_i32_0 = arith.constant 0 : i32
    return %arg0, %c0_i32 : i32, i32
  }
  func.func @transform_1(%arg0: i32) -> (i32, i32) {
    %c0_i32 = arith.constant 0 : i32
    %c0_i32_0 = arith.constant 0 : i32
    %c0_i32_1 = arith.constant 0 : i32
    return %c0_i32, %c0_i32_0 : i32, i32
  }
  func.func @transform_2(%arg0: i32) -> (i32, i32) {
    %c0_i32 = arith.constant 0 : i32
    %c0_i32_0 = arith.constant 0 : i32
    %c0_i32_1 = arith.constant 0 : i32
    return %c0_i32, %c0_i32_0 : i32, i32
  }
  func.func @transform_3(%arg0: i32) -> (i32, i32) {
    %c0_i32 = arith.constant 0 : i32
    %c0_i32_0 = arith.constant 0 : i32
    %c0_i32_1 = arith.constant 0 : i32
    return %c0_i32, %c0_i32_0 : i32, i32
  }
  func.func @transform_4(%arg0: i32) -> (i32, i32) {
    %c0_i32 = arith.constant 0 : i32
    %c0_i32_0 = arith.constant 0 : i32
    %c0_i32_1 = arith.constant 0 : i32
    return %c0_i32, %c0_i32_0 : i32, i32
  }
  func.func @transform_5(%arg0: i32) -> (i32, i32) {
    %c0_i32 = arith.constant 0 : i32
    %c0_i32_0 = arith.constant 0 : i32
    %c0_i32_1 = arith.constant 0 : i32
    return %c0_i32, %c0_i32_0 : i32, i32
  }
  func.func @transform_6(%arg0: i32) -> (i32, i32) {
    %c0_i32 = arith.constant 0 : i32
    %c0_i32_0 = arith.constant 0 : i32
    %c0_i32_1 = arith.constant 0 : i32
    return %c0_i32, %c0_i32_0 : i32, i32
  }
  func.func @transform_7(%arg0: i32) -> (i32, i32) {
    %c0_i32 = arith.constant 0 : i32
    %c0_i32_0 = arith.constant 0 : i32
    %c0_i32_1 = arith.constant 0 : i32
    return %c0_i32, %c0_i32_0 : i32, i32
  }
  func.func @transform_8(%arg0: i32) -> (i32, i32) {
    %c0_i32 = arith.constant 0 : i32
    %c0_i32_0 = arith.constant 0 : i32
    %c0_i32_1 = arith.constant 0 : i32
    return %c0_i32, %c0_i32_0 : i32, i32
  }
  func.func @transform_9(%arg0: i32) -> (i32, i32) {
    %c0_i32 = arith.constant 0 : i32
    %c0_i32_0 = arith.constant 0 : i32
    return %arg0, %c0_i32 : i32, i32
  }
}

</mosaic_0001>

<bundles_post_ra>
// kernel: tpu_custom_call.1
= control target key start
LH: loop header
LB: loop body
LE: loop exit
PB: predicated region body
PF: predicated region fallthrough
CT: control target
= control target key end

     0   :  { %14 = vsyncpa [#allocation3], 0  ;;  %s962_s0 = inlined_call_operand.vmem [shape: f32[2,16], index: 0, kind: input, shape index: {}]   ;;  %s963_s1 = inlined_call_operand.vmem [shape: f32[16,128], index: 1, kind: input, shape index: {}]   ;;  %s964_s2 = inlined_call_operand.vmem [shape: f32[1,128], index: 2, kind: input, shape index: {}]   ;;  %s965_s3 = inlined_call_operand.vmem [shape: f32[128,128], index: 3, kind: input, shape index: {}]   ;;  %s966_s4 = inlined_call_operand.vmem [shape: f32[1,128], index: 4, kind: input, shape index: {}]   ;;  %s967_s5 = inlined_call_operand.hbm [shape: f32[128,128], index: 5, kind: input, shape index: {}]   ;;  %s968_s6 = inlined_call_operand.vmem [shape: f32[1,128], index: 6, kind: input, shape index: {}]   ;;  %s969_s7 = inlined_call_operand.vmem [shape: f32[128,16], index: 7, kind: input, shape index: {}]   ;;  %s970_s8 = inlined_call_operand.vmem [shape: f32[1,16], index: 8, kind: input, shape index: {}]   ;;  %s971_s9 = inlined_call_operand.hbm [shape: f32[2,16], index: 9, kind: output, shape index: {}]  }
   0x1   :  { %15 = vsyncpa [#allocation4], 0  ;;  %s731_s30 = smov [#allocation2]   ;;  %s683_s13 = scalar_lea.hbm %s967_s5, 2048 }
   0x2   :  { %s31_s10 = sshll.u32 %s731_s30, 4  ;;  %p684_p0 = scmp.ne.s32.totalorder %s967_s5, %s683_s13  ;;  %s32_s10 = int_to_ptr.vmem [resolvable:$true] %s31_s10 }
   0x3   :  { %p687_p1 = scmp.lt.u32.totalorder %s683_s13, %s967_s5 }
   0x5   :  { %p689_p2 = pnand %p687_p1, %p684_p0 }
   0x7   :  { %692 = shalt.err (!%p689_p2)
}
   0x8   :  { %s693_s18 = scalar_lea.vmem %s32_s10, 2048  ;;  %p698_p4 = scmp.lt.s32.totalorder %s32_s10, %s32_s10 }
   0x9   :  { %p694_p3 = scmp.ne.s32.totalorder %s32_s10, %s693_s18  ;;  %p699_p5 = scmp.lt.s32.totalorder %s693_s18, %s693_s18 }
   0xb   :  { %p700_p6 = por %p699_p5, %p698_p4 }
   0xd   :  { %p701_p7 = pnand %p700_p6, %p694_p3 }
   0xf   :  { %704 = shalt.err (!%p701_p7)
}
  0x10   :  { %s732_s19 = smov 128   ;;  %s733_s20 = smov 8  }
  0x11   :  { %37 = dma.hbm_to_vmem [thread:$0]  %s967_s5, 2048, %s32_s10, [#allocation3], %s732_s19, %s732_s19, %s733_s20  }
  0x12   :  { %727 = dma.done.wait [#allocation3], 2048  }
  0x13   :  { %728 = vsyncadd [#allocation3], 4294965248  ;;  %v734_v0 = vmov 0.0|0.0   ;;  %vm735_vm0 = vmmov 0   ;;  %v736_v1 = vmov 0.0   ;;  %v48_v2 = vld [vmem:[%s963_s1] sm:$0xff] }
  0x14   :  { %601 = vmatprep.subr.bf16.mxu0 %v734_v0  ;;  %493 = vmatprep.mubr.msk.f32.mxu0 %vm735_vm0, %v736_v1  ;;  %v49_v3 = vld [vmem:[%s963_s1 + $0x8] sm:$0xff]  ;;  %v132_v5 = vld [vmem:[%s965_s3] sm:$0xff]  ;;  %v134_v7 = vld [vmem:[%s965_s3 + $0x10] sm:$0xff]  ;;  %vm57_vm1 = vcmask 130048   ;;  %s737_s24 = smov [#allocation5]   ;;  %vm413_vm2 = vcmask 123904  }
  0x15   :  { %604 = vmatprep.subr.bf16.mxu1 %v734_v0  ;;  %528 = vmatprep.mubr.msk.f32.mxu1 %vm735_vm0, %v736_v1  ;;  %v602_v4 = vpack.c.bf16 %v49_v3, %v48_v2  ;;  %v133_v6 = vld [vmem:[%s965_s3 + $0x8] sm:$0xff]  ;;  %v135_v9 = vld [vmem:[%s965_s3 + $0x18] sm:$0xff]  ;;  %v47_v10 = vld [vmem:[%s962_s0] sm:$0x3]  ;;  %s421_s5 = sshll.u32 %s737_s24, 4  ;;  %s422_s5 = int_to_ptr.vmem [resolvable:$true] %s421_s5 }
  0x16   :  { %v605_v8 = vpack.c.bf16 %v133_v6, %v132_v5  ;;  %v608_v11 = vpack.c.bf16 %v135_v9, %v134_v7  ;;  %v136_v12 = vld [vmem:[%s965_s3 + $0x20] sm:$0xff]  ;;  %v137_v13 = vld [vmem:[%s965_s3 + $0x28] sm:$0xff]  ;;  %v138_v15 = vld [vmem:[%s965_s3 + $0x30] sm:$0xff]  ;;  %p710_p9 = scmp.lt.s32.totalorder %s422_s5, %s422_s5 }
  0x17   :  { %603 = vmatpush3.bf16.msra.mxu0 %v602_v4  ;;  %v611_v14 = vpack.c.bf16 %v137_v13, %v136_v12  ;;  %v139_v16 = vld [vmem:[%s965_s3 + $0x38] sm:$0xff]  ;;  %v140_v18 = vld [vmem:[%s965_s3 + $0x40] sm:$0xff]  ;;  %v141_v19 = vld [vmem:[%s965_s3 + $0x48] sm:$0xff] }
  0x18   :  { %606 = vmatpush3.bf16.msra.mxu1 %v605_v8  ;;  %628 = vmatprep.subr.bf16.mxu0 %v734_v0  ;;  %v614_v17 = vpack.c.bf16 %v139_v16, %v138_v15  ;;  %v617_v20 = vpack.c.bf16 %v141_v19, %v140_v18  ;;  %v142_v21 = vld [vmem:[%s965_s3 + $0x50] sm:$0xff]  ;;  %v143_v22 = vld [vmem:[%s965_s3 + $0x58] sm:$0xff]  ;;  %v144_v24 = vld [vmem:[%s965_s3 + $0x60] sm:$0xff] }
  0x19   :  { %607 = vmatprep.subr.bf16.mxu1 %v734_v0  ;;  %v620_v23 = vpack.c.bf16 %v143_v22, %v142_v21  ;;  %v145_v25 = vld [vmem:[%s965_s3 + $0x68] sm:$0xff]  ;;  %v146_v27 = vld [vmem:[%s965_s3 + $0x70] sm:$0xff]  ;;  %v147_v28 = vld [vmem:[%s965_s3 + $0x78] sm:$0xff] }
  0x1a   :  { %494 = vmatmul.mubr.msk.f32.vlgmr.msra.gmra.mrb[0].mxu0 %vm57_vm1, %v47_v10  ;;  %v623_v26 = vpack.c.bf16 %v145_v25, %v144_v24  ;;  %v626_v29 = vpack.c.bf16 %v147_v28, %v146_v27  ;;  %v226_v30 = vld [vmem:[#allocation2] sm:$0xff]  ;;  %v227_v31 = vld [vmem:[#allocation2 + $0x8] sm:$0xff]  ;;  %v228_v32 = vld [vmem:[#allocation2 + $0x10] sm:$0xff] }
  0x1b   :  { %563 = vmatprep.mubr.msk.f32.mxu0 %vm735_vm0, %v736_v1  ;;  %v629_v33 = vpack.c.bf16 %v227_v31, %v226_v30  ;;  %v229_v34 = vld [vmem:[#allocation2 + $0x18] sm:$0xff]  ;;  %v230_v36 = vld [vmem:[#allocation2 + $0x20] sm:$0xff]  ;;  %v231_v37 = vld [vmem:[#allocation2 + $0x28] sm:$0xff] }
  0x1c   :  { %609 = vmatpush3.bf16.msra.mxu1 %v608_v11  ;;  %v632_v35 = vpack.c.bf16 %v229_v34, %v228_v32  ;;  %v635_v38 = vpack.c.bf16 %v231_v37, %v230_v36  ;;  %v232_v39 = vld [vmem:[#allocation2 + $0x30] sm:$0xff]  ;;  %v233_v40 = vld [vmem:[#allocation2 + $0x38] sm:$0xff]  ;;  %v234_v42 = vld [vmem:[#allocation2 + $0x40] sm:$0xff] }
  0x1d   :  { %610 = vmatprep.subr.bf16.mxu1 %v734_v0  ;;  %630 = vmatpush3.bf16.msra.mxu0 %v629_v33  ;;  %v638_v41 = vpack.c.bf16 %v233_v40, %v232_v39  ;;  %v235_v43 = vld [vmem:[#allocation2 + $0x48] sm:$0xff]  ;;  %v236_v45 = vld [vmem:[#allocation2 + $0x50] sm:$0xff]  ;;  %v237_v46 = vld [vmem:[#allocation2 + $0x58] sm:$0xff] }
  0x1e   :  { %631 = vmatprep.subr.bf16.mxu0 %v734_v0  ;;  %v641_v44 = vpack.c.bf16 %v235_v43, %v234_v42  ;;  %v644_v47 = vpack.c.bf16 %v237_v46, %v236_v45  ;;  %v238_v48 = vld [vmem:[#allocation2 + $0x60] sm:$0xff]  ;;  %v239_v49 = vld [vmem:[#allocation2 + $0x68] sm:$0xff]  ;;  %v240_v56 = vld [vmem:[#allocation2 + $0x70] sm:$0xff] }
  0x1f   :  { %v647_v50 = vpack.c.bf16 %v239_v49, %v238_v48  ;;  %v430_v51 = vld [vmem:[%s964_s2] ss:$0 sm:$0xff]  ;;  %v241_v57 = vld [vmem:[#allocation2 + $0x78] sm:$0xff]  ;;  %v321_v60 = vld [vmem:[%s969_s7 + $0x8] sm:$0xff] }
  0x20   :  { %612 = vmatpush3.bf16.msra.mxu1 %v611_v14  ;;  %v650_v58 = vpack.c.bf16 %v241_v57, %v240_v56  ;;  %v320_v59 = vld [vmem:[%s969_s7] sm:$0xff]  ;;  %v322_v61 = vld [vmem:[%s969_s7 + $0x10] sm:$0xff]  ;;  %v323_v63 = vld [vmem:[%s969_s7 + $0x18] sm:$0xff] }
  0x21   :  { %613 = vmatprep.subr.bf16.mxu1 %v734_v0  ;;  %633 = vmatpush3.bf16.msra.mxu0 %v632_v35  ;;  %v653_v62 = vpack.c.bf16 %v321_v60, %v320_v59  ;;  %v324_v2 = vld [vmem:[%s969_s7 + $0x20] sm:$0xff]  ;;  %v325_v3 = vld [vmem:[%s969_s7 + $0x28] sm:$0xff]  ;;  %v326_v5 = vld [vmem:[%s969_s7 + $0x30] sm:$0xff] }
  0x22   :  { %634 = vmatprep.subr.bf16.mxu0 %v734_v0  ;;  %v659_v4 = vpack.c.bf16 %v325_v3, %v324_v2  ;;  %v327_v6 = vld [vmem:[%s969_s7 + $0x38] sm:$0xff]  ;;  %v328_v8 = vld [vmem:[%s969_s7 + $0x40] sm:$0xff]  ;;  %v329_v9 = vld [vmem:[%s969_s7 + $0x48] sm:$0xff] }
  0x23   :  { %v662_v7 = vpack.c.bf16 %v327_v6, %v326_v5  ;;  %v665_v10 = vpack.c.bf16 %v329_v9, %v328_v8  ;;  %v330_v11 = vld [vmem:[%s969_s7 + $0x50] sm:$0xff]  ;;  %v331_v12 = vld [vmem:[%s969_s7 + $0x58] sm:$0xff]  ;;  %v332_v14 = vld [vmem:[%s969_s7 + $0x60] sm:$0xff] }
  0x24   :  { %615 = vmatpush3.bf16.msra.mxu1 %v614_v17  ;;  %v668_v13 = vpack.c.bf16 %v331_v12, %v330_v11  ;;  %v333_v15 = vld [vmem:[%s969_s7 + $0x68] sm:$0xff]  ;;  %v432_v17 = vld [vmem:[%s966_s4] ss:$0 sm:$0xff]  ;;  %v334_v22 = vld [vmem:[%s969_s7 + $0x70] sm:$0xff] }
  0x25   :  { %616 = vmatprep.subr.bf16.mxu1 %v734_v0  ;;  %636 = vmatpush3.bf16.msra.mxu0 %v635_v38  ;;  %v671_v16 = vpack.c.bf16 %v333_v15, %v332_v14 }
  0x26   :  { %637 = vmatprep.subr.bf16.mxu0 %v734_v0 }
  0x28   :  { %618 = vmatpush3.bf16.msra.mxu1 %v617_v20 }
  0x29   :  { %619 = vmatprep.subr.bf16.mxu1 %v734_v0  ;;  %639 = vmatpush3.bf16.msra.mxu0 %v638_v41 }
  0x2a   :  { %640 = vmatprep.subr.bf16.mxu0 %v734_v0 }
  0x2c   :  { %621 = vmatpush3.bf16.msra.mxu1 %v620_v23  ;;  %v335_v23 = vld [vmem:[%s969_s7 + $0x78] sm:$0xff]  ;;  %s705_s7 = scalar_lea.vmem %s422_s5, 32 }
  0x2d   :  { %622 = vmatprep.subr.bf16.mxu1 %v734_v0  ;;  %642 = vmatpush3.bf16.msra.mxu0 %v641_v44  ;;  %v674_v24 = vpack.c.bf16 %v335_v23, %v334_v22  ;;  %p706_p8 = scmp.ne.s32.totalorder %s422_s5, %s705_s7  ;;  %p711_p10 = scmp.lt.s32.totalorder %s705_s7, %s705_s7 }
  0x2e   :  { %643 = vmatprep.subr.bf16.mxu0 %v734_v0 }
  0x2f   :  { %p712_p11 = por %p711_p10, %p710_p9 }
  0x30   :  { %624 = vmatpush3.bf16.msra.mxu1 %v623_v26 }
  0x31   :  { %625 = vmatprep.subr.bf16.mxu1 %v734_v0  ;;  %645 = vmatpush3.bf16.msra.mxu0 %v644_v47  ;;  %p713_p12 = pnand %p712_p11, %p706_p8 }
  0x32   :  { %646 = vmatprep.subr.bf16.mxu0 %v734_v0 }
  0x34   :  { %627 = vmatpush3.bf16.msra.mxu1 %v626_v29  ;;  %v434_v29 = vld [vmem:[%s970_s8] ss:$0 sm:$0xff] }
  0x35   :  { %652 = vmatprep.subr.bf16.mxu1 %v734_v0  ;;  %648 = vmatpush3.bf16.msra.mxu0 %v647_v50 }
  0x36   :  { %649 = vmatprep.subr.bf16.mxu0 %v734_v0 }
  0x39   :  { %651 = vmatpush3.bf16.msra.mxu0 %v650_v58 }
  0xed   :  { %v127_v52 = vpop.f32.mrb[0].mxu0 }
  0xee   :  { %v128_v53 = vadd.f32 %v430_v51, %v127_v52  ;;  %v495_v54 = vpop.f32.mrb[1].mxu0 }
  0xf0   :  { %v131_v55 = vmax.f32 %v128_v53, 0.0 }
  0xf2   :  { %529 = vmatmul.mubr.f32.vlgmr.msra.gmra.mrb[0].mxu1 %v131_v55 }
  0xf3   :  { %598 = vmatprep.mubr.msk.f32.mxu1 %vm735_vm0, %v736_v1  ;;  %654 = vmatpush3.bf16.msra.mxu1 %v653_v62  ;;  %v656_v1 = vpack.c.bf16 %v323_v63, %v322_v61 }
  0xf4   :  { %655 = vmatprep.subr.bf16.mxu1 %v734_v0 }
  0xf7   :  { %657 = vmatpush3.bf16.msra.mxu1 %v656_v1 }
  0xf8   :  { %658 = vmatprep.subr.bf16.mxu1 %v734_v0 }
  0xfb   :  { %660 = vmatpush3.bf16.msra.mxu1 %v659_v4 }
  0xfc   :  { %661 = vmatprep.subr.bf16.mxu1 %v734_v0 }
  0xff   :  { %663 = vmatpush3.bf16.msra.mxu1 %v662_v7 }
 0x100   :  { %664 = vmatprep.subr.bf16.mxu1 %v734_v0 }
 0x103   :  { %666 = vmatpush3.bf16.msra.mxu1 %v665_v10 }
 0x104   :  { %667 = vmatprep.subr.bf16.mxu1 %v734_v0 }
 0x107   :  { %669 = vmatpush3.bf16.msra.mxu1 %v668_v13 }
 0x108   :  { %670 = vmatprep.subr.bf16.mxu1 %v734_v0 }
 0x10b   :  { %672 = vmatpush3.bf16.msra.mxu1 %v671_v16 }
 0x10c   :  { %673 = vmatprep.subr.bf16.mxu1 %v734_v0  ;;  %v433_v0 = vld [vmem:[%s968_s6] ss:$0 sm:$0xff] }
 0x10f   :  { %675 = vmatpush3.bf16.msra.mxu1 %v674_v24 }
 0x1c5   :  { %v221_v18 = vpop.f32.mrb[0].mxu1 }
 0x1c6   :  { %v222_v19 = vadd.f32 %v432_v17, %v221_v18  ;;  %v530_v20 = vpop.f32.mrb[1].mxu1 }
 0x1c8   :  { %v225_v21 = vmax.f32 %v222_v19, 0.0 }
 0x1ca   :  { %564 = vmatmul.mubr.f32.vlgmr.msra.gmra.mrb[2].mxu0 %v225_v21 }
 0x29d   :  { %v315_v25 = vpop.f32.mrb[2].mxu0 }
 0x29e   :  { %v316_v26 = vadd.f32 %v433_v0, %v315_v25  ;;  %v565_v27 = vpop.f32.mrb[3].mxu0 }
 0x2a0   :  { %v319_v28 = vmax.f32 %v316_v26, 0.0 }
 0x2a2   :  { %599 = vmatmul.mubr.f32.vlgmr.msra.gmra.mrb[2].mxu1 %v319_v28 }
 0x375   :  { %v409_v30 = vpop.f32.mrb[2].mxu1 }
 0x376   :  { %v410_v31 = vadd.f32 %v434_v29, %v409_v30  ;;  %v600_v32 = vpop.f32.mrb[3].mxu1 }
 0x378   :  { %414 = vst.msk [vmem:[#allocation5] sm:$0x3] %vm413_vm2, %v410_v31 }
 0x379   :  { %716 = shalt.err (!%p713_p12)
}
 0x37a   :  { %s717_s26 = scalar_lea.hbm %s971_s9, 32 }
 0x37b   :  { %p718_p13 = scmp.ne.s32.totalorder %s971_s9, %s717_s26  ;;  %p721_p0 = scmp.lt.u32.totalorder %s717_s26, %s971_s9 }
 0x37d   :  { %p723_p1 = pnand %p721_p0, %p718_p13 }
 0x37f   :  { %726 = shalt.err (!%p723_p1)
}
 0x380   :  { %424 = dma.vmem_to_hbm [thread:$0]  %s422_s5, 32, %s971_s9, [#allocation4]  }
 0x381   :  { %729 = dma.done.wait [#allocation4], 32  }
 0x382   :  { %730 = vsyncadd [#allocation4], 4294967264 }
 0x383   :  { %428 = vsyncpa [#allocation3], 1 }
 0x384   :  { %429 = vsyncpa [#allocation4], 1 }

// kernel: tpu_custom_call.1
= control target key start
LH: loop header
LB: loop body
LE: loop exit
PB: predicated region body
PF: predicated region fallthrough
CT: control target
= control target key end

     0   :  { %14 = vsyncpa [#allocation3], 0  ;;  %s962_s0 = inlined_call_operand.vmem [shape: f32[2,16], index: 0, kind: input, shape index: {}]   ;;  %s963_s1 = inlined_call_operand.vmem [shape: f32[16,128], index: 1, kind: input, shape index: {}]   ;;  %s964_s2 = inlined_call_operand.vmem [shape: f32[1,128], index: 2, kind: input, shape index: {}]   ;;  %s965_s3 = inlined_call_operand.vmem [shape: f32[128,128], index: 3, kind: input, shape index: {}]   ;;  %s966_s4 = inlined_call_operand.vmem [shape: f32[1,128], index: 4, kind: input, shape index: {}]   ;;  %s967_s5 = inlined_call_operand.hbm [shape: f32[128,128], index: 5, kind: input, shape index: {}]   ;;  %s968_s6 = inlined_call_operand.vmem [shape: f32[1,128], index: 6, kind: input, shape index: {}]   ;;  %s969_s7 = inlined_call_operand.vmem [shape: f32[128,16], index: 7, kind: input, shape index: {}]   ;;  %s970_s8 = inlined_call_operand.vmem [shape: f32[1,16], index: 8, kind: input, shape index: {}]   ;;  %s971_s9 = inlined_call_operand.hbm [shape: f32[2,16], index: 9, kind: output, shape index: {}]  }
   0x1   :  { %15 = vsyncpa [#allocation4], 0  ;;  %s731_s30 = smov [#allocation2]   ;;  %s683_s13 = scalar_lea.hbm %s967_s5, 2048 }
   0x2   :  { %s31_s10 = sshll.u32 %s731_s30, 4  ;;  %p684_p0 = scmp.ne.s32.totalorder %s967_s5, %s683_s13  ;;  %s32_s10 = int_to_ptr.vmem [resolvable:$true] %s31_s10 }
   0x3   :  { %p687_p1 = scmp.lt.u32.totalorder %s683_s13, %s967_s5 }
   0x5   :  { %p689_p2 = pnand %p687_p1, %p684_p0 }
   0x7   :  { %692 = shalt.err (!%p689_p2)
}
   0x8   :  { %s693_s18 = scalar_lea.vmem %s32_s10, 2048  ;;  %p698_p4 = scmp.lt.s32.totalorder %s32_s10, %s32_s10 }
   0x9   :  { %p694_p3 = scmp.ne.s32.totalorder %s32_s10, %s693_s18  ;;  %p699_p5 = scmp.lt.s32.totalorder %s693_s18, %s693_s18 }
   0xb   :  { %p700_p6 = por %p699_p5, %p698_p4 }
   0xd   :  { %p701_p7 = pnand %p700_p6, %p694_p3 }
   0xf   :  { %704 = shalt.err (!%p701_p7)
}
  0x10   :  { %s732_s19 = smov 128   ;;  %s733_s20 = smov 8  }
  0x11   :  { %37 = dma.hbm_to_vmem [thread:$0]  %s967_s5, 2048, %s32_s10, [#allocation3], %s732_s19, %s732_s19, %s733_s20  }
  0x12   :  { %727 = dma.done.wait [#allocation3], 2048  }
  0x13   :  { %728 = vsyncadd [#allocation3], 4294965248  ;;  %v734_v0 = vmov 0.0|0.0   ;;  %vm735_vm0 = vmmov 0   ;;  %v736_v1 = vmov 0.0   ;;  %v48_v2 = vld [vmem:[%s963_s1] sm:$0xff] }
  0x14   :  { %601 = vmatprep.subr.bf16.mxu0 %v734_v0  ;;  %493 = vmatprep.mubr.msk.f32.mxu0 %vm735_vm0, %v736_v1  ;;  %v49_v3 = vld [vmem:[%s963_s1 + $0x8] sm:$0xff]  ;;  %v132_v5 = vld [vmem:[%s965_s3] sm:$0xff]  ;;  %v134_v7 = vld [vmem:[%s965_s3 + $0x10] sm:$0xff]  ;;  %vm57_vm1 = vcmask 130048   ;;  %s737_s24 = smov [#allocation5]   ;;  %vm413_vm2 = vcmask 123904  }
  0x15   :  { %604 = vmatprep.subr.bf16.mxu1 %v734_v0  ;;  %528 = vmatprep.mubr.msk.f32.mxu1 %vm735_vm0, %v736_v1  ;;  %v602_v4 = vpack.c.bf16 %v49_v3, %v48_v2  ;;  %v133_v6 = vld [vmem:[%s965_s3 + $0x8] sm:$0xff]  ;;  %v135_v9 = vld [vmem:[%s965_s3 + $0x18] sm:$0xff]  ;;  %v47_v10 = vld [vmem:[%s962_s0] sm:$0x3]  ;;  %s421_s5 = sshll.u32 %s737_s24, 4  ;;  %s422_s5 = int_to_ptr.vmem [resolvable:$true] %s421_s5 }
  0x16   :  { %v605_v8 = vpack.c.bf16 %v133_v6, %v132_v5  ;;  %v608_v11 = vpack.c.bf16 %v135_v9, %v134_v7  ;;  %v136_v12 = vld [vmem:[%s965_s3 + $0x20] sm:$0xff]  ;;  %v137_v13 = vld [vmem:[%s965_s3 + $0x28] sm:$0xff]  ;;  %v138_v15 = vld [vmem:[%s965_s3 + $0x30] sm:$0xff]  ;;  %p710_p9 = scmp.lt.s32.totalorder %s422_s5, %s422_s5 }
  0x17   :  { %603 = vmatpush3.bf16.msra.mxu0 %v602_v4  ;;  %v611_v14 = vpack.c.bf16 %v137_v13, %v136_v12  ;;  %v139_v16 = vld [vmem:[%s965_s3 + $0x38] sm:$0xff]  ;;  %v140_v18 = vld [vmem:[%s965_s3 + $0x40] sm:$0xff]  ;;  %v141_v19 = vld [vmem:[%s965_s3 + $0x48] sm:$0xff] }
  0x18   :  { %606 = vmatpush3.bf16.msra.mxu1 %v605_v8  ;;  %628 = vmatprep.subr.bf16.mxu0 %v734_v0  ;;  %v614_v17 = vpack.c.bf16 %v139_v16, %v138_v15  ;;  %v617_v20 = vpack.c.bf16 %v141_v19, %v140_v18  ;;  %v142_v21 = vld [vmem:[%s965_s3 + $0x50] sm:$0xff]  ;;  %v143_v22 = vld [vmem:[%s965_s3 + $0x58] sm:$0xff]  ;;  %v144_v24 = vld [vmem:[%s965_s3 + $0x60] sm:$0xff] }
  0x19   :  { %607 = vmatprep.subr.bf16.mxu1 %v734_v0  ;;  %v620_v23 = vpack.c.bf16 %v143_v22, %v142_v21  ;;  %v145_v25 = vld [vmem:[%s965_s3 + $0x68] sm:$0xff]  ;;  %v146_v27 = vld [vmem:[%s965_s3 + $0x70] sm:$0xff]  ;;  %v147_v28 = vld [vmem:[%s965_s3 + $0x78] sm:$0xff] }
  0x1a   :  { %494 = vmatmul.mubr.msk.f32.vlgmr.msra.gmra.mrb[0].mxu0 %vm57_vm1, %v47_v10  ;;  %v623_v26 = vpack.c.bf16 %v145_v25, %v144_v24  ;;  %v626_v29 = vpack.c.bf16 %v147_v28, %v146_v27  ;;  %v226_v30 = vld [vmem:[#allocation2] sm:$0xff]  ;;  %v227_v31 = vld [vmem:[#allocation2 + $0x8] sm:$0xff]  ;;  %v228_v32 = vld [vmem:[#allocation2 + $0x10] sm:$0xff] }
  0x1b   :  { %563 = vmatprep.mubr.msk.f32.mxu0 %vm735_vm0, %v736_v1  ;;  %v629_v33 = vpack.c.bf16 %v227_v31, %v226_v30  ;;  %v229_v34 = vld [vmem:[#allocation2 + $0x18] sm:$0xff]  ;;  %v230_v36 = vld [vmem:[#allocation2 + $0x20] sm:$0xff]  ;;  %v231_v37 = vld [vmem:[#allocation2 + $0x28] sm:$0xff] }
  0x1c   :  { %609 = vmatpush3.bf16.msra.mxu1 %v608_v11  ;;  %v632_v35 = vpack.c.bf16 %v229_v34, %v228_v32  ;;  %v635_v38 = vpack.c.bf16 %v231_v37, %v230_v36  ;;  %v232_v39 = vld [vmem:[#allocation2 + $0x30] sm:$0xff]  ;;  %v233_v40 = vld [vmem:[#allocation2 + $0x38] sm:$0xff]  ;;  %v234_v42 = vld [vmem:[#allocation2 + $0x40] sm:$0xff] }
  0x1d   :  { %610 = vmatprep.subr.bf16.mxu1 %v734_v0  ;;  %630 = vmatpush3.bf16.msra.mxu0 %v629_v33  ;;  %v638_v41 = vpack.c.bf16 %v233_v40, %v232_v39  ;;  %v235_v43 = vld [vmem:[#allocation2 + $0x48] sm:$0xff]  ;;  %v236_v45 = vld [vmem:[#allocation2 + $0x50] sm:$0xff]  ;;  %v237_v46 = vld [vmem:[#allocation2 + $0x58] sm:$0xff] }
  0x1e   :  { %631 = vmatprep.subr.bf16.mxu0 %v734_v0  ;;  %v641_v44 = vpack.c.bf16 %v235_v43, %v234_v42  ;;  %v644_v47 = vpack.c.bf16 %v237_v46, %v236_v45  ;;  %v238_v48 = vld [vmem:[#allocation2 + $0x60] sm:$0xff]  ;;  %v239_v49 = vld [vmem:[#allocation2 + $0x68] sm:$0xff]  ;;  %v240_v56 = vld [vmem:[#allocation2 + $0x70] sm:$0xff] }
  0x1f   :  { %v647_v50 = vpack.c.bf16 %v239_v49, %v238_v48  ;;  %v430_v51 = vld [vmem:[%s964_s2] ss:$0 sm:$0xff]  ;;  %v241_v57 = vld [vmem:[#allocation2 + $0x78] sm:$0xff]  ;;  %v321_v60 = vld [vmem:[%s969_s7 + $0x8] sm:$0xff] }
  0x20   :  { %612 = vmatpush3.bf16.msra.mxu1 %v611_v14  ;;  %v650_v58 = vpack.c.bf16 %v241_v57, %v240_v56  ;;  %v320_v59 = vld [vmem:[%s969_s7] sm:$0xff]  ;;  %v322_v61 = vld [vmem:[%s969_s7 + $0x10] sm:$0xff]  ;;  %v323_v63 = vld [vmem:[%s969_s7 + $0x18] sm:$0xff] }
  0x21   :  { %613 = vmatprep.subr.bf16.mxu1 %v734_v0  ;;  %633 = vmatpush3.bf16.msra.mxu0 %v632_v35  ;;  %v653_v62 = vpack.c.bf16 %v321_v60, %v320_v59  ;;  %v324_v2 = vld [vmem:[%s969_s7 + $0x20] sm:$0xff]  ;;  %v325_v3 = vld [vmem:[%s969_s7 + $0x28] sm:$0xff]  ;;  %v326_v5 = vld [vmem:[%s969_s7 + $0x30] sm:$0xff] }
  0x22   :  { %634 = vmatprep.subr.bf16.mxu0 %v734_v0  ;;  %v659_v4 = vpack.c.bf16 %v325_v3, %v324_v2  ;;  %v327_v6 = vld [vmem:[%s969_s7 + $0x38] sm:$0xff]  ;;  %v328_v8 = vld [vmem:[%s969_s7 + $0x40] sm:$0xff]  ;;  %v329_v9 = vld [vmem:[%s969_s7 + $0x48] sm:$0xff] }
  0x23   :  { %v662_v7 = vpack.c.bf16 %v327_v6, %v326_v5  ;;  %v665_v10 = vpack.c.bf16 %v329_v9, %v328_v8  ;;  %v330_v11 = vld [vmem:[%s969_s7 + $0x50] sm:$0xff]  ;;  %v331_v12 = vld [vmem:[%s969_s7 + $0x58] sm:$0xff]  ;;  %v332_v14 = vld [vmem:[%s969_s7 + $0x60] sm:$0xff] }
  0x24   :  { %615 = vmatpush3.bf16.msra.mxu1 %v614_v17  ;;  %v668_v13 = vpack.c.bf16 %v331_v12, %v330_v11  ;;  %v333_v15 = vld [vmem:[%s969_s7 + $0x68] sm:$0xff]  ;;  %v432_v17 = vld [vmem:[%s966_s4] ss:$0 sm:$0xff]  ;;  %v334_v22 = vld [vmem:[%s969_s7 + $0x70] sm:$0xff] }
  0x25   :  { %616 = vmatprep.subr.bf16.mxu1 %v734_v0  ;;  %636 = vmatpush3.bf16.msra.mxu0 %v635_v38  ;;  %v671_v16 = vpack.c.bf16 %v333_v15, %v332_v14 }
  0x26   :  { %637 = vmatprep.subr.bf16.mxu0 %v734_v0 }
  0x28   :  { %618 = vmatpush3.bf16.msra.mxu1 %v617_v20 }
  0x29   :  { %619 = vmatprep.subr.bf16.mxu1 %v734_v0  ;;  %639 = vmatpush3.bf16.msra.mxu0 %v638_v41 }
  0x2a   :  { %640 = vmatprep.subr.bf16.mxu0 %v734_v0 }
  0x2c   :  { %621 = vmatpush3.bf16.msra.mxu1 %v620_v23  ;;  %v335_v23 = vld [vmem:[%s969_s7 + $0x78] sm:$0xff]  ;;  %s705_s7 = scalar_lea.vmem %s422_s5, 32 }
  0x2d   :  { %622 = vmatprep.subr.bf16.mxu1 %v734_v0  ;;  %642 = vmatpush3.bf16.msra.mxu0 %v641_v44  ;;  %v674_v24 = vpack.c.bf16 %v335_v23, %v334_v22  ;;  %p706_p8 = scmp.ne.s32.totalorder %s422_s5, %s705_s7  ;;  %p711_p10 = scmp.lt.s32.totalorder %s705_s7, %s705_s7 }
  0x2e   :  { %643 = vmatprep.subr.bf16.mxu0 %v734_v0 }
  0x2f   :  { %p712_p11 = por %p711_p10, %p710_p9 }
  0x30   :  { %624 = vmatpush3.bf16.msra.mxu1 %v623_v26 }
  0x31   :  { %625 = vmatprep.subr.bf16.mxu1 %v734_v0  ;;  %645 = vmatpush3.bf16.msra.mxu0 %v644_v47  ;;  %p713_p12 = pnand %p712_p11, %p706_p8 }
  0x32   :  { %646 = vmatprep.subr.bf16.mxu0 %v734_v0 }
  0x34   :  { %627 = vmatpush3.bf16.msra.mxu1 %v626_v29  ;;  %v434_v29 = vld [vmem:[%s970_s8] ss:$0 sm:$0xff] }
  0x35   :  { %652 = vmatprep.subr.bf16.mxu1 %v734_v0  ;;  %648 = vmatpush3.bf16.msra.mxu0 %v647_v50 }
  0x36   :  { %649 = vmatprep.subr.bf16.mxu0 %v734_v0 }
  0x39   :  { %651 = vmatpush3.bf16.msra.mxu0 %v650_v58 }
  0xed   :  { %v127_v52 = vpop.f32.mrb[0].mxu0 }
  0xee   :  { %v128_v53 = vadd.f32 %v430_v51, %v127_v52  ;;  %v495_v54 = vpop.f32.mrb[1].mxu0 }
  0xf0   :  { %v131_v55 = vmax.f32 %v128_v53, 0.0 }
  0xf2   :  { %529 = vmatmul.mubr.f32.vlgmr.msra.gmra.mrb[0].mxu1 %v131_v55 }
  0xf3   :  { %598 = vmatprep.mubr.msk.f32.mxu1 %vm735_vm0, %v736_v1  ;;  %654 = vmatpush3.bf16.msra.mxu1 %v653_v62  ;;  %v656_v1 = vpack.c.bf16 %v323_v63, %v322_v61 }
  0xf4   :  { %655 = vmatprep.subr.bf16.mxu1 %v734_v0 }
  0xf7   :  { %657 = vmatpush3.bf16.msra.mxu1 %v656_v1 }
  0xf8   :  { %658 = vmatprep.subr.bf16.mxu1 %v734_v0 }
  0xfb   :  { %660 = vmatpush3.bf16.msra.mxu1 %v659_v4 }
  0xfc   :  { %661 = vmatprep.subr.bf16.mxu1 %v734_v0 }
  0xff   :  { %663 = vmatpush3.bf16.msra.mxu1 %v662_v7 }
 0x100   :  { %664 = vmatprep.subr.bf16.mxu1 %v734_v0 }
 0x103   :  { %666 = vmatpush3.bf16.msra.mxu1 %v665_v10 }
 0x104   :  { %667 = vmatprep.subr.bf16.mxu1 %v734_v0 }
 0x107   :  { %669 = vmatpush3.bf16.msra.mxu1 %v668_v13 }
 0x108   :  { %670 = vmatprep.subr.bf16.mxu1 %v734_v0 }
 0x10b   :  { %672 = vmatpush3.bf16.msra.mxu1 %v671_v16 }
 0x10c   :  { %673 = vmatprep.subr.bf16.mxu1 %v734_v0  ;;  %v433_v0 = vld [vmem:[%s968_s6] ss:$0 sm:$0xff] }
 0x10f   :  { %675 = vmatpush3.bf16.msra.mxu1 %v674_v24 }
 0x1c5   :  { %v221_v18 = vpop.f32.mrb[0].mxu1 }
 0x1c6   :  { %v222_v19 = vadd.f32 %v432_v17, %v221_v18  ;;  %v530_v20 = vpop.f32.mrb[1].mxu1 }
 0x1c8   :  { %v225_v21 = vmax.f32 %v222_v19, 0.0 }
 0x1ca   :  { %564 = vmatmul.mubr.f32.vlgmr.msra.gmra.mrb[2].mxu0 %v225_v21 }
 0x29d   :  { %v315_v25 = vpop.f32.mrb[2].mxu0 }
 0x29e   :  { %v316_v26 = vadd.f32 %v433_v0, %v315_v25  ;;  %v565_v27 = vpop.f32.mrb[3].mxu0 }
 0x2a0   :  { %v319_v28 = vmax.f32 %v316_v26, 0.0 }
 0x2a2   :  { %599 = vmatmul.mubr.f32.vlgmr.msra.gmra.mrb[2].mxu1 %v319_v28 }
 0x375   :  { %v409_v30 = vpop.f32.mrb[2].mxu1 }
 0x376   :  { %v410_v31 = vadd.f32 %v434_v29, %v409_v30  ;;  %v600_v32 = vpop.f32.mrb[3].mxu1 }
 0x378   :  { %414 = vst.msk [vmem:[#allocation5] sm:$0x3] %vm413_vm2, %v410_v31 }
 0x379   :  { %716 = shalt.err (!%p713_p12)
}
 0x37a   :  { %s717_s26 = scalar_lea.hbm %s971_s9, 32 }
 0x37b   :  { %p718_p13 = scmp.ne.s32.totalorder %s971_s9, %s717_s26  ;;  %p721_p0 = scmp.lt.u32.totalorder %s717_s26, %s971_s9 }
 0x37d   :  { %p723_p1 = pnand %p721_p0, %p718_p13 }
 0x37f   :  { %726 = shalt.err (!%p723_p1)
}
 0x380   :  { %424 = dma.vmem_to_hbm [thread:$0]  %s422_s5, 32, %s971_s9, [#allocation4]  }
 0x381   :  { %729 = dma.done.wait [#allocation4], 32  }
 0x382   :  { %730 = vsyncadd [#allocation4], 4294967264 }
 0x383   :  { %428 = vsyncpa [#allocation3], 1 }
 0x384   :  { %429 = vsyncpa [#allocation4], 1 }

</bundles_post_ra>
